<compile_context>
chip_gen: v7x
topology: tpu7x:2x2x1
jax: 0.10.0
libtpu: 0.0.40
codegen_flags: <defaults>
</compile_context>

<pallas_src>
import functools

import jax
import jax.numpy as jnp
from jax.experimental import pallas as pl
from jax.experimental.pallas import tpu as pltpu


# ----------------------------------------------------------------------------
# Kernel
# ----------------------------------------------------------------------------
def _rl_policy_time_kernel(inp_ref, p_ref, out_ref, *, feat, hidden):
    eps = 1e-5
    inv_temperature = 1.0 / 5.0

    h = hidden
    h2 = hidden // 2
    h4 = hidden // 4
    in_dim = 2 * feat

    # --- static lane offsets into the single packed parameter slab ----------
    w1_l = 0
    w2_l = w1_l + h
    wg_l = w2_l + h2
    vec_l = wg_l + h4

    # Weight matrices (static ref slices of the one slab -> one DMA total).
    w1 = p_ref[0:in_dim, w1_l:w1_l + h]          # (2*feat, h)
    w2 = p_ref[0:h, w2_l:w2_l + h2]              # (h, h/2)
    wg = p_ref[0:in_dim, wg_l:wg_l + h4]         # (2*feat, h/4)

    # Small vectors packed row-wise in lanes [vec_l, vec_l+h).
    b1 = p_ref[0:1, vec_l:vec_l + h]
    g1 = p_ref[1:2, vec_l:vec_l + h]
    be1 = p_ref[2:3, vec_l:vec_l + h]
    b2 = p_ref[3:4, vec_l:vec_l + h2]
    g2 = p_ref[4:5, vec_l:vec_l + h2]
    be2 = p_ref[5:6, vec_l:vec_l + h2]
    bg = p_ref[6:7, vec_l:vec_l + h4]
    wdl = p_ref[7:8, vec_l:vec_l + h2]           # decision weights (local part)
    wdg = p_ref[8:9, vec_l:vec_l + h4]           # decision weights (global part)
    bd = p_ref[9:10, vec_l:vec_l + 1]            # decision bias (scalar)

    # --- packed activations: lanes [0, 2*feat) = cat(x, y),
    #                         lanes [2*feat, 4*feat) = cat(x_global, y_global)
    xy = inp_ref[:, 0:in_dim].astype(jnp.float32)
    gg = inp_ref[:, in_dim:2 * in_dim].astype(jnp.float32)

    # --- feature_net: Linear -> LayerNorm -> ReLU -> Dropout -> Linear ->
    #                  LayerNorm -> ReLU
    a = jnp.dot(xy, w1, preferred_element_type=jnp.float32) + b1
    mu = jnp.mean(a, axis=-1, keepdims=True)
    ac = a - mu
    var = jnp.mean(ac * ac, axis=-1, keepdims=True)
    a = jnp.maximum(ac * jax.lax.rsqrt(var + eps) * g1 + be1, 0.0)
    # Dropout(0.1) is identity in eval mode.
    # TODO(synk): training-mode dropout (stochastic mask via pltpu.prng_*) not implemented.

    b = jnp.dot(a, w2, preferred_element_type=jnp.float32) + b2
    mu2 = jnp.mean(b, axis=-1, keepdims=True)
    bc = b - mu2
    var2 = jnp.mean(bc * bc, axis=-1, keepdims=True)
    local = jnp.maximum(bc * jax.lax.rsqrt(var2 + eps) * g2 + be2, 0.0)   # (B, h/2)

    # --- global_context: Linear -> ReLU ------------------------------------
    gfeat = jnp.maximum(jnp.dot(gg, wg, preferred_element_type=jnp.float32) + bg,
                        0.0)                                              # (B, h/4)

    # --- decision layer on cat([local, global]): width-1 matmuls replaced by
    #     VPU multiply + cross-lane reductions (no MXU pushes).
    logits = (jnp.sum(local * wdl, axis=-1, keepdims=True)
              + jnp.sum(gfeat * wdg, axis=-1, keepdims=True)
              + bd)                                                       # (B, 1)

    out_ref[...] = jax.nn.sigmoid(logits * inv_temperature)


# ----------------------------------------------------------------------------
# Wrapper
# ----------------------------------------------------------------------------
def rl_policy_time_forward(x, y, x_global, y_global, params):
    """Pallas-backed forward of RLPolicy_time (eval mode)."""
    B, feat = x.shape
    assert y.shape == (B, feat), "x and y must share feature width"
    assert x_global.shape == (B, feat) and y_global.shape == (B, feat)
    hidden = int(params["hidden"])
    assert hidden % 4 == 0

    # One lane-dense activation operand: (B, 4*feat) == (8, 128) at test size.
    inp = jnp.concatenate([x, y, x_global, y_global], axis=1)

    vmem = pl.BlockSpec(memory_space=pltpu.MemorySpace.VMEM)
    kernel = functools.partial(_rl_policy_time_kernel, feat=feat, hidden=hidden)

    return pl.pallas_call(
        kernel,
        out_shape=jax.ShapeDtypeStruct((B, 1), jnp.float32),
        in_specs=[vmem, vmem],
        out_specs=vmem,
    )(inp, params["packed"])


# ----------------------------------------------------------------------------
# Parameters (synthetic, deterministic), packed for the kernel
# ----------------------------------------------------------------------------
def init_params(input_dim, hidden_dim, key):
    """Synthetic parameters mirroring the PyTorch module shapes, pre-packed.

    Everything lives in ONE lane-dense f32 slab `packed` of shape
    (ceil8(max(input_dim, hidden, 10)), ceil128(2h + h/2 + h/4)):
        lanes [0, h)              rows [0, input_dim) : w1   (in -> h)
        lanes [h, h+h/2)          rows [0, h)         : w2   (h -> h/2)
        lanes [h+h/2, h+3h/4)     rows [0, input_dim) : wg   (in -> h/4)
        lanes [h+3h/4, 2h+3h/4)   rows 0..9           : b1,g1,be1,b2,g2,be2,
                                                        bg,wd_local,wd_global,bd
    Raw (unpacked) params are kept for the pure-JAX reference only.
    """
    ks = jax.random.split(key, 16)
    f32 = jnp.float32
    h, h2, h4 = hidden_dim, hidden_dim // 2, hidden_dim // 4

    def rnd(k, shape, scale=0.02):
        return (scale * jax.random.normal(k, shape)).astype(f32)

    w1 = rnd(ks[0], (input_dim, h))
    w2 = rnd(ks[1], (h, h2))
    wg = rnd(ks[2], (input_dim, h4))

    b1 = rnd(ks[3], (h,))
    g1 = (1.0 + rnd(ks[4], (h,))).astype(f32)
    be1 = rnd(ks[5], (h,))
    b2 = rnd(ks[6], (h2,))
    g2 = (1.0 + rnd(ks[7], (h2,))).astype(f32)
    be2 = rnd(ks[8], (h2,))
    bg = rnd(ks[9], (h4,))
    wdl = rnd(ks[10], (h2,))
    wdg = rnd(ks[11], (h4,))
    bd = rnd(ks[12], (1,))

    w1_l = 0
    w2_l = w1_l + h
    wg_l = w2_l + h2
    vec_l = wg_l + h4
    lanes_used = vec_l + h
    lanes = max(128, ((lanes_used + 127) // 128) * 128)
    rows_used = max(input_dim, h, 10)
    rows = ((rows_used + 7) // 8) * 8

    packed = jnp.zeros((rows, lanes), f32)
    packed = packed.at[0:input_dim, w1_l:w1_l + h].set(w1)
    packed = packed.at[0:h, w2_l:w2_l + h2].set(w2)
    packed = packed.at[0:input_dim, wg_l:wg_l + h4].set(wg)
    for r, v in enumerate((b1, g1, be1, b2, g2, be2, bg, wdl, wdg, bd)):
        packed = packed.at[r, vec_l:vec_l + v.shape[0]].set(v)

    return {
        "packed": packed, "hidden": hidden_dim, "input_dim": input_dim,
        # raw copies for the reference implementation
        "w1": w1, "w2": w2, "wg": wg, "b1": b1, "g1": g1, "be1": be1,
        "b2": b2, "g2": g2, "be2": be2, "bg": bg, "wdl": wdl, "wdg": wdg,
        "bd": bd,
    }


# ----------------------------------------------------------------------------
# Pure-JAX reference (for correctness check)
# ----------------------------------------------------------------------------
def rl_policy_time_reference(x, y, xg, yg, params):
    eps = 1e-5

    comb = jnp.concatenate([x, y], axis=1).astype(jnp.float32)
    a = comb @ params["w1"] + params["b1"]
    mu = a.mean(-1, keepdims=True)
    var = ((a - mu) ** 2).mean(-1, keepdims=True)
    a = jnp.maximum((a - mu) / jnp.sqrt(var + eps) * params["g1"] + params["be1"], 0.0)

    b = a @ params["w2"] + params["b2"]
    mu2 = b.mean(-1, keepdims=True)
    var2 = ((b - mu2) ** 2).mean(-1, keepdims=True)
    local = jnp.maximum((b - mu2) / jnp.sqrt(var2 + eps) * params["g2"] + params["be2"], 0.0)

    gcomb = jnp.concatenate([xg, yg], axis=1).astype(jnp.float32)
    gfeat = jnp.maximum(gcomb @ params["wg"] + params["bg"], 0.0)

    logits = local @ params["wdl"][:, None] + gfeat @ params["wdg"][:, None] + params["bd"]
    return jax.nn.sigmoid(logits / 5.0)


# ----------------------------------------------------------------------------
# Main
# ----------------------------------------------------------------------------
if __name__ == "__main__":
    key = jax.random.PRNGKey(0)
    k_x, k_y, k_xg, k_yg, k_p = jax.random.split(key, 5)

    B = 8
    feat = 32                 # per-stream feature size
    input_dim = 2 * feat      # dim of torch.cat((x, y), dim=1)
    hidden_dim = 32

    x = jax.random.normal(k_x, (B, feat), dtype=jnp.float32)
    y = jax.random.normal(k_y, (B, feat), dtype=jnp.float32)
    x_global = jax.random.normal(k_xg, (B, feat), dtype=jnp.float32)
    y_global = jax.random.normal(k_yg, (B, feat), dtype=jnp.float32)

    params = init_params(input_dim, hidden_dim, k_p)

    out = rl_policy_time_forward(x, y, x_global, y_global, params)
    out = jax.block_until_ready(out)

    ref = rl_policy_time_reference(x, y, x_global, y_global, params)
    ref = jax.block_until_ready(ref)

    assert out.shape == (B, 1)
    assert bool(jnp.all(jnp.isfinite(out)))
    assert bool(jnp.all((out > 0.0) & (out < 1.0)))
    assert bool(jnp.allclose(out, ref, rtol=1e-4, atol=1e-5))
    print("KERNEL_OK")
</pallas_src>

<mosaic_0001>
module attributes {stable_mosaic.version = 11 : i64} {
  func.func @_rl_policy_time_kernel(%arg0: memref<8x128xf32, #tpu.memory_space<vmem>>, %arg1: memref<64x128xf32, #tpu.memory_space<vmem>>, %arg2: memref<8x1xf32, #tpu.memory_space<vmem>>) attributes {dimension_semantics = [], scalar_prefetch = 0 : i64, scratch_operands = 0 : i64, tpu.core_type = #tpu.core_type<tc>} {
    %c0 = arith.constant 0 : index
    %c0_0 = arith.constant 0 : index
    %0 = vector.load %arg1[%c0, %c0_0] : memref<64x128xf32, #tpu.memory_space<vmem>>, vector<64x32xf32>
    %c0_1 = arith.constant 0 : index
    %c32 = arith.constant 32 : index
    %1 = vector.load %arg1[%c0_1, %c32] : memref<64x128xf32, #tpu.memory_space<vmem>>, vector<32x16xf32>
    %c0_2 = arith.constant 0 : index
    %c48 = arith.constant 48 : index
    %2 = vector.load %arg1[%c0_2, %c48] : memref<64x128xf32, #tpu.memory_space<vmem>>, vector<64x8xf32>
    %c0_3 = arith.constant 0 : index
    %c56 = arith.constant 56 : index
    %3 = vector.load %arg1[%c0_3, %c56] : memref<64x128xf32, #tpu.memory_space<vmem>>, vector<1x32xf32>
    %c1 = arith.constant 1 : index
    %c56_4 = arith.constant 56 : index
    %4 = vector.load %arg1[%c1, %c56_4] : memref<64x128xf32, #tpu.memory_space<vmem>>, vector<1x32xf32>
    %c2 = arith.constant 2 : index
    %c56_5 = arith.constant 56 : index
    %5 = vector.load %arg1[%c2, %c56_5] : memref<64x128xf32, #tpu.memory_space<vmem>>, vector<1x32xf32>
    %c3 = arith.constant 3 : index
    %c56_6 = arith.constant 56 : index
    %6 = vector.load %arg1[%c3, %c56_6] : memref<64x128xf32, #tpu.memory_space<vmem>>, vector<1x16xf32>
    %c4 = arith.constant 4 : index
    %c56_7 = arith.constant 56 : index
    %7 = vector.load %arg1[%c4, %c56_7] : memref<64x128xf32, #tpu.memory_space<vmem>>, vector<1x16xf32>
    %c5 = arith.constant 5 : index
    %c56_8 = arith.constant 56 : index
    %8 = vector.load %arg1[%c5, %c56_8] : memref<64x128xf32, #tpu.memory_space<vmem>>, vector<1x16xf32>
    %c6 = arith.constant 6 : index
    %c56_9 = arith.constant 56 : index
    %9 = vector.load %arg1[%c6, %c56_9] : memref<64x128xf32, #tpu.memory_space<vmem>>, vector<1x8xf32>
    %c7 = arith.constant 7 : index
    %c56_10 = arith.constant 56 : index
    %10 = vector.load %arg1[%c7, %c56_10] : memref<64x128xf32, #tpu.memory_space<vmem>>, vector<1x16xf32>
    %c8 = arith.constant 8 : index
    %c56_11 = arith.constant 56 : index
    %11 = vector.load %arg1[%c8, %c56_11] : memref<64x128xf32, #tpu.memory_space<vmem>>, vector<1x8xf32>
    %c9 = arith.constant 9 : index
    %c56_12 = arith.constant 56 : index
    %12 = vector.load %arg1[%c9, %c56_12] : memref<64x128xf32, #tpu.memory_space<vmem>>, vector<1x1xf32>
    %c0_13 = arith.constant 0 : index
    %c0_14 = arith.constant 0 : index
    %13 = vector.load %arg0[%c0_13, %c0_14] : memref<8x128xf32, #tpu.memory_space<vmem>>, vector<8x64xf32>
    %c0_15 = arith.constant 0 : index
    %c64 = arith.constant 64 : index
    %14 = vector.load %arg0[%c0_15, %c64] : memref<8x128xf32, #tpu.memory_space<vmem>>, vector<8x64xf32>
    %cst = arith.constant dense<0.000000e+00> : vector<8x32xf32>
    %15 = tpu.matmul %13, %0, %cst {dimension_numbers = #tpu.dot_dimension_numbers<[1], [0], [0], [1], [0, 0, 1, 1], [], []>} : vector<8x64xf32>, vector<64x32xf32>, vector<8x32xf32> -> vector<8x32xf32>
    %16 = vector.broadcast %3 : vector<1x32xf32> to vector<8x32xf32>
    %17 = arith.addf %15, %16 : vector<8x32xf32>
    %cst_16 = arith.constant dense<0.000000e+00> : vector<8xf32>
    %18 = vector.multi_reduction <add>, %17, %cst_16 [1] : vector<8x32xf32> to vector<8xf32>
    %19 = vector.shape_cast %18 : vector<8xf32> to vector<8x1xf32>
    %cst_17 = arith.constant 3.200000e+01 : f32
    %20 = vector.broadcast %cst_17 : f32 to vector<8x1xf32>
    %21 = arith.divf %19, %20 : vector<8x1xf32>
    %22 = vector.broadcast %21 : vector<8x1xf32> to vector<8x32xf32>
    %23 = arith.subf %17, %22 : vector<8x32xf32>
    %24 = arith.mulf %23, %23 : vector<8x32xf32>
    %cst_18 = arith.constant dense<0.000000e+00> : vector<8xf32>
    %25 = vector.multi_reduction <add>, %24, %cst_18 [1] : vector<8x32xf32> to vector<8xf32>
    %26 = vector.shape_cast %25 : vector<8xf32> to vector<8x1xf32>
    %cst_19 = arith.constant 3.200000e+01 : f32
    %27 = vector.broadcast %cst_19 : f32 to vector<8x1xf32>
    %28 = arith.divf %26, %27 : vector<8x1xf32>
    %cst_20 = arith.constant 9.99999974E-6 : f32
    %29 = vector.broadcast %cst_20 : f32 to vector<8x1xf32>
    %30 = arith.addf %28, %29 : vector<8x1xf32>
    %31 = math.rsqrt %30 : vector<8x1xf32>
    %32 = vector.broadcast %31 : vector<8x1xf32> to vector<8x32xf32>
    %33 = arith.mulf %23, %32 : vector<8x32xf32>
    %34 = vector.broadcast %4 : vector<1x32xf32> to vector<8x32xf32>
    %35 = arith.mulf %33, %34 : vector<8x32xf32>
    %36 = vector.broadcast %5 : vector<1x32xf32> to vector<8x32xf32>
    %37 = arith.addf %35, %36 : vector<8x32xf32>
    %cst_21 = arith.constant 0.000000e+00 : f32
    %38 = vector.broadcast %cst_21 : f32 to vector<8x32xf32>
    %39 = arith.maximumf %37, %38 : vector<8x32xf32>
    %cst_22 = arith.constant dense<0.000000e+00> : vector<8x16xf32>
    %40 = tpu.matmul %39, %1, %cst_22 {dimension_numbers = #tpu.dot_dimension_numbers<[1], [0], [0], [1], [0, 0, 1, 1], [], []>} : vector<8x32xf32>, vector<32x16xf32>, vector<8x16xf32> -> vector<8x16xf32>
    %41 = vector.broadcast %6 : vector<1x16xf32> to vector<8x16xf32>
    %42 = arith.addf %40, %41 : vector<8x16xf32>
    %cst_23 = arith.constant dense<0.000000e+00> : vector<8xf32>
    %43 = vector.multi_reduction <add>, %42, %cst_23 [1] : vector<8x16xf32> to vector<8xf32>
    %44 = vector.shape_cast %43 : vector<8xf32> to vector<8x1xf32>
    %cst_24 = arith.constant 1.600000e+01 : f32
    %45 = vector.broadcast %cst_24 : f32 to vector<8x1xf32>
    %46 = arith.divf %44, %45 : vector<8x1xf32>
    %47 = vector.broadcast %46 : vector<8x1xf32> to vector<8x16xf32>
    %48 = arith.subf %42, %47 : vector<8x16xf32>
    %49 = arith.mulf %48, %48 : vector<8x16xf32>
    %cst_25 = arith.constant dense<0.000000e+00> : vector<8xf32>
    %50 = vector.multi_reduction <add>, %49, %cst_25 [1] : vector<8x16xf32> to vector<8xf32>
    %51 = vector.shape_cast %50 : vector<8xf32> to vector<8x1xf32>
    %cst_26 = arith.constant 1.600000e+01 : f32
    %52 = vector.broadcast %cst_26 : f32 to vector<8x1xf32>
    %53 = arith.divf %51, %52 : vector<8x1xf32>
    %cst_27 = arith.constant 9.99999974E-6 : f32
    %54 = vector.broadcast %cst_27 : f32 to vector<8x1xf32>
    %55 = arith.addf %53, %54 : vector<8x1xf32>
    %56 = math.rsqrt %55 : vector<8x1xf32>
    %57 = vector.broadcast %56 : vector<8x1xf32> to vector<8x16xf32>
    %58 = arith.mulf %48, %57 : vector<8x16xf32>
    %59 = vector.broadcast %7 : vector<1x16xf32> to vector<8x16xf32>
    %60 = arith.mulf %58, %59 : vector<8x16xf32>
    %61 = vector.broadcast %8 : vector<1x16xf32> to vector<8x16xf32>
    %62 = arith.addf %60, %61 : vector<8x16xf32>
    %cst_28 = arith.constant 0.000000e+00 : f32
    %63 = vector.broadcast %cst_28 : f32 to vector<8x16xf32>
    %64 = arith.maximumf %62, %63 : vector<8x16xf32>
    %cst_29 = arith.constant dense<0.000000e+00> : vector<8x8xf32>
    %65 = tpu.matmul %14, %2, %cst_29 {dimension_numbers = #tpu.dot_dimension_numbers<[1], [0], [0], [1], [0, 0, 1, 1], [], []>} : vector<8x64xf32>, vector<64x8xf32>, vector<8x8xf32> -> vector<8x8xf32>
    %66 = vector.broadcast %9 : vector<1x8xf32> to vector<8x8xf32>
    %67 = arith.addf %65, %66 : vector<8x8xf32>
    %cst_30 = arith.constant 0.000000e+00 : f32
    %68 = vector.broadcast %cst_30 : f32 to vector<8x8xf32>
    %69 = arith.maximumf %67, %68 : vector<8x8xf32>
    %70 = vector.broadcast %10 : vector<1x16xf32> to vector<8x16xf32>
    %71 = arith.mulf %64, %70 : vector<8x16xf32>
    %cst_31 = arith.constant dense<0.000000e+00> : vector<8xf32>
    %72 = vector.multi_reduction <add>, %71, %cst_31 [1] : vector<8x16xf32> to vector<8xf32>
    %73 = vector.shape_cast %72 : vector<8xf32> to vector<8x1xf32>
    %74 = vector.broadcast %11 : vector<1x8xf32> to vector<8x8xf32>
    %75 = arith.mulf %69, %74 : vector<8x8xf32>
    %cst_32 = arith.constant dense<0.000000e+00> : vector<8xf32>
    %76 = vector.multi_reduction <add>, %75, %cst_32 [1] : vector<8x8xf32> to vector<8xf32>
    %77 = vector.shape_cast %76 : vector<8xf32> to vector<8x1xf32>
    %78 = arith.addf %73, %77 : vector<8x1xf32>
    %79 = vector.broadcast %12 : vector<1x1xf32> to vector<8x1xf32>
    %80 = arith.addf %78, %79 : vector<8x1xf32>
    %cst_33 = arith.constant 2.000000e-01 : f32
    %81 = vector.broadcast %cst_33 : f32 to vector<8x1xf32>
    %82 = arith.mulf %80, %81 : vector<8x1xf32>
    %83 = arith.negf %82 : vector<8x1xf32>
    %84 = math.exp %83 : vector<8x1xf32>
    %cst_34 = arith.constant 1.000000e+00 : f32
    %85 = vector.broadcast %cst_34 : f32 to vector<8x1xf32>
    %86 = arith.addf %85, %84 : vector<8x1xf32>
    %87 = arith.divf %85, %86 : vector<8x1xf32>
    %c0_35 = arith.constant 0 : index
    %c0_36 = arith.constant 0 : index
    %88 = vector.load %arg2[%c0_35, %c0_36] : memref<8x1xf32, #tpu.memory_space<vmem>>, vector<8x1xf32>
    tpu.vector_store %arg2[%c0_35, %c0_36], %87 {strides = array<i32>} : memref<8x1xf32, #tpu.memory_space<vmem>>, vector<8x1xf32>,
    return
  }
}

</mosaic_0001>

<bundles_post_ra>
// kernel: tpu_custom_call.1
= control target key start
LH: loop header
LB: loop body
LE: loop exit
PB: predicated region body
PF: predicated region fallthrough
CT: control target
= control target key end

     0   :  { %7 = vsyncpa [#allocation3], 0  ;;  %s779_s0 = inlined_call_operand.hbm [shape: f32[8,128], index: 0, kind: input, shape index: {}]   ;;  %s780_s1 = inlined_call_operand.hbm [shape: f32[64,128], index: 1, kind: input, shape index: {}]   ;;  %s781_s2 = inlined_call_operand.vmem [shape: f32[8,1], index: 2, kind: output, shape index: {}]  }
   0x1   :  { %8 = vsyncpa [#allocation5], 0  ;;  %s685_s9 = smov [#allocation2]   ;;  %s686_s11 = smov [#allocation4]  }
   0x2   :  { %s15_s10 = sshll.u32 %s685_s9, 4  ;;  %s24_s12 = sshll.u32 %s686_s11, 4  ;;  %s16_s10 = int_to_ptr.vmem [resolvable:$true] %s15_s10  ;;  %s711_s12 = int_to_ptr.vmem [resolvable:$true] %s24_s12 }
   0x3   :  { %s637_s15 = scalar_lea.hbm %s779_s0, 128 }
   0x4   :  { %p638_p0 = scmp.ne.s32.totalorder %s779_s0, %s637_s15  ;;  %p641_p1 = scmp.lt.u32.totalorder %s637_s15, %s779_s0 }
   0x6   :  { %p643_p2 = pnand %p641_p1, %p638_p0 }
   0x8   :  { %646 = shalt.err (!%p643_p2)
}
   0x9   :  { %s647_s20 = scalar_lea.vmem %s16_s10, 128  ;;  %p652_p4 = scmp.lt.s32.totalorder %s16_s10, %s16_s10 }
   0xa   :  { %p648_p3 = scmp.ne.s32.totalorder %s16_s10, %s647_s20  ;;  %p653_p5 = scmp.lt.s32.totalorder %s647_s20, %s647_s20 }
   0xc   :  { %p654_p6 = por %p653_p5, %p652_p4 }
   0xe   :  { %p655_p7 = pnand %p654_p6, %p648_p3 }
  0x10   :  { %658 = shalt.err (!%p655_p7)
}
  0x11   :  { %18 = dma.hbm_to_vmem [thread:$0]  %s779_s0, 128, %s16_s10, [#allocation3]  }
  0x12   :  { %s659_s25 = scalar_lea.hbm %s780_s1, 1024 }
  0x13   :  { %p660_p8 = scmp.ne.s32.totalorder %s780_s1, %s659_s25  ;;  %p663_p9 = scmp.lt.u32.totalorder %s659_s25, %s780_s1 }
  0x15   :  { %p665_p10 = pnand %p663_p9, %p660_p8 }
  0x17   :  { %668 = shalt.err (!%p665_p10)
}
  0x18   :  { %s669_s30 = scalar_lea.vmem %s711_s12, 1024  ;;  %p674_p12 = scmp.lt.s32.totalorder %s711_s12, %s711_s12 }
  0x19   :  { %p670_p11 = scmp.ne.s32.totalorder %s711_s12, %s669_s30  ;;  %p675_p13 = scmp.lt.s32.totalorder %s669_s30, %s669_s30 }
  0x1b   :  { %p676_p0 = por %p675_p13, %p674_p12 }
  0x1d   :  { %p677_p1 = pnand %p676_p0, %p670_p11 }
  0x1f   :  { %680 = shalt.err (!%p677_p1)
}
  0x20   :  { %s687_s0 = smov 128   ;;  %s688_s3 = smov 8  }
  0x21   :  { %30 = dma.hbm_to_vmem [thread:$0]  %s780_s1, 1024, %s711_s12, [#allocation5], %s687_s0, %s687_s0, %s688_s3  }
  0x22   :  { %681 = dma.done.wait [#allocation3], 128  }
  0x23   :  { %682 = vsyncadd [#allocation3], 4294967168 }
  0x24   :  { %683 = dma.done.wait [#allocation5], 1024  }
  0x25   :  { %684 = vsyncadd [#allocation5], 4294966272  ;;  %v689_v0 = vmov 0.0|0.0   ;;  %vm690_vm0 = vmmov 0   ;;  %v691_v1 = vmov 0.0   ;;  %v37_v2 = vld [vmem:[#allocation4] sm:$0xff] }
  0x26   :  { %558 = vmatprep.subr.bf16.mxu0 %v689_v0  ;;  %525 = vmatprep.mubr.msk.f32.mxu0 %vm690_vm0, %v691_v1  ;;  %v38_v3 = vld [vmem:[#allocation4 + $0x8] sm:$0xff]  ;;  %v39_v4 = vld [vmem:[#allocation4 + $0x10] sm:$0xff]  ;;  %v40_v7 = vld [vmem:[#allocation4 + $0x18] sm:$0xff]  ;;  %s692_s1 = smov 72   ;;  %vm68_vm1 = vcmask 523264   ;;  %s693_s6 = smov 96  }
  0x27   :  { %570 = vmatprep.subr.bf16.mxu1 %v689_v0  ;;  %536 = vmatprep.mubr.msk.f32.mxu1 %vm690_vm0, %v691_v1  ;;  %v609_v5 = vpack.i.bf16 %v38_v3, %v37_v2  ;;  %v559_v6 = vpack.c.bf16 %v38_v3, %v37_v2  ;;  %v562_v8 = vpack.c.bf16 %v40_v7, %v39_v4  ;;  %v472_v9 = vld [vmem:[#allocation4] ss:$0 sm:$0xff]  ;;  %v42_v11 = vld [vmem:[#allocation4 + $0x28] sm:$0xff]  ;;  %v43_v13 = vld [vmem:[#allocation4 + $0x30] sm:$0xff]  ;;  %vm142_vm2 = vcmask 261120   ;;  %s694_s7 = smov 80  }
  0x28   :  { %v41_v10 = vld [vmem:[#allocation4 + $0x20] sm:$0xff]  ;;  %65 = vrot.lane.b32.xlu0 %v472_v9, %s692_s1  ;;  %v44_v14 = vld [vmem:[#allocation4 + $0x38] sm:$0xff]  ;;  %v604_v18 = vpack.i.bf16 %v40_v7, %v39_v4  ;;  %s695_s8 = smov 64   ;;  %vm273_vm3 = vcmask 130048   ;;  %vm443_vm4 = vcmask 64512   ;;  %vm464_vm5 = vcmask 7168  }
  0x29   :  { %560 = vmatpush3.bf16.msra.mxu0 %v559_v6  ;;  %v565_v12 = vpack.c.bf16 %v42_v11, %v41_v10  ;;  %v568_v15 = vpack.c.bf16 %v44_v14, %v43_v13  ;;  %v59_v16 = vld [vmem:[#allocation2] sm:$0xff]  ;;  %600 = vrot.lane.b32.xlu1 %v609_v5, %s693_s6  ;;  %v474_v17 = vld [vmem:[#allocation4 + $0x1] ss:$0 sm:$0xff]  ;;  %v475_v38 = vld [vmem:[#allocation4 + $0x2] ss:$0 sm:$0xff]  ;;  %v619_v39 = vpack.i.bf16 %v42_v11, %v41_v10 }
  0x2a   :  { %561 = vmatprep.subr.bf16.mxu0 %v689_v0  ;;  %v624_v40 = vpack.i.bf16 %v44_v14, %v43_v13  ;;  %v476_v41 = vld [vmem:[#allocation4 + $0x3] ss:$0 sm:$0xff]  ;;  %v479_v10 = vld [vmem:[#allocation4 + $0x5] ss:$0 sm:$0xff]  ;;  %v480_v11 = vld [vmem:[#allocation4 + $0x6] ss:$0 sm:$0xff] }
  0x2d   :  { %563 = vmatpush3.bf16.msra.mxu0 %v562_v8  ;;  %162 = vrot.lane.b32.xlu1 %v474_v17, %s692_s1 }
  0x2e   :  { %564 = vmatprep.subr.bf16.mxu0 %v689_v0 }
  0x31   :  { %566 = vmatpush3.bf16.msra.mxu0 %v565_v12  ;;  %605 = vrot.lane.b32.xlu1 %v604_v18, %s693_s6  ;;  %v483_v12 = vld [vmem:[#allocation4 + $0x8] ss:$0 sm:$0xff] }
  0x32   :  { %567 = vmatprep.subr.bf16.mxu0 %v689_v0 }
  0x35   :  { %569 = vmatpush3.bf16.msra.mxu0 %v568_v15 }
  0x38   :  { %526 = vmatmul.mubr.msk.f32.vlgmr.msra.gmra.mrb[0].mxu0 %vm68_vm1, %v59_v16 }
  0x9a   :  { %v66_v19 = vpop.permute.xlu0 %65 }
  0x9b   :  { %v601_v24 = vpop.permute.xlu1 %600 }
  0x9c   :  { %v603_v25 = vunpack.i.h.bf16 %v601_v24  ;;  %v602_v26 = vunpack.i.l.bf16 %v601_v24 }
  0x9e   :  { %v571_v27 = vpack.c.bf16 %v603_v25, %v602_v26  ;;  %v478_v26 = vld [vmem:[#allocation4 + $0x4] ss:$0 sm:$0xff] }
  0x9f   :  { %v163_v28 = vpop.permute.xlu1 %162 }
  0xa0   :  { %572 = vmatpush3.bf16.msra.mxu1 %v571_v27  ;;  %v482_v27 = vld [vmem:[#allocation4 + $0x7] ss:$0 sm:$0xff] }
  0xa1   :  { %573 = vmatprep.subr.bf16.mxu1 %v689_v0 }
  0xa3   :  { %v606_v29 = vpop.permute.xlu1 %605 }
  0xa4   :  { %v608_v30 = vunpack.i.h.bf16 %v606_v29  ;;  %v607_v31 = vunpack.i.l.bf16 %v606_v29 }
  0xa6   :  { %v574_v32 = vpack.c.bf16 %v608_v30, %v607_v31 }
  0xa8   :  { %575 = vmatpush3.bf16.msra.mxu1 %v574_v32 }
  0xa9   :  { %576 = vmatprep.subr.bf16.mxu1 %v689_v0 }
 0x10b   :  { %v138_v20 = vpop.f32.mrb[0].mxu0 }
 0x10c   :  { %v139_v21 = vadd.f32 %v138_v20, %v66_v19  ;;  %v527_v22 = vpop.f32.mrb[1].mxu0 }
 0x10e   :  { %v143_v23 = vsel %vm142_vm2, %v139_v21, 0.0 }
 0x10f   :  { %144 = vadd.xlane.f32.xlu0 %v143_v23 }
 0x125   :  { %615 = vrot.lane.b32.xlu0 %v604_v18, %s694_s7 }
 0x19c   :  { %v145_v33 = vpop.xlane.xlu0 %144 }
 0x19d   :  { %v147_v34 = vmul.f32 0.03125, %v145_v33 }
 0x19f   :  { %v148_v35 = vsub.f32 %v139_v21, %v147_v34 }
 0x1a0   :  { %v616_v52 = vpop.permute.xlu0 %615 }
 0x1a1   :  { %v149_v36 = vmul.f32 %v148_v35, %v148_v35  ;;  %v618_v56 = vunpack.i.h.bf16 %v616_v52  ;;  %v617_v57 = vunpack.i.l.bf16 %v616_v52 }
 0x1a3   :  { %v150_v37 = vsel %vm142_vm2, %v149_v36, 0.0  ;;  %v580_v59 = vpack.c.bf16 %v618_v56, %v617_v57 }
 0x1a4   :  { %151 = vadd.xlane.f32.xlu1 %v150_v37 }
 0x1b5   :  { %171 = vrot.lane.b32.xlu1 %v475_v38, %s692_s1 }
 0x1b9   :  { %610 = vrot.lane.b32.xlu1 %v609_v5, %s694_s7 }
 0x1bd   :  { %620 = vrot.lane.b32.xlu1 %v619_v39, %s694_s7 }
 0x1c1   :  { %625 = vrot.lane.b32.xlu1 %v624_v40, %s694_s7 }
 0x1c5   :  { %311 = vrot.lane.b32.xlu1 %v59_v16, %s695_s8 }
 0x1c9   :  { %197 = vrot.lane.b32.xlu1 %v476_v41, %s692_s1  ;;  %v484_v41 = vld [vmem:[#allocation4 + $0x9] ss:$0 sm:$0xff] }
 0x231   :  { %v152_v42 = vpop.xlane.xlu1 %151 }
 0x232   :  { %v153_v43 = vmul.f32 0.03125, %v152_v42 }
 0x234   :  { %v154_v44 = vadd.f32 1e-05, %v153_v43 }
 0x235   :  { %v172_v45 = vpop.permute.xlu1 %171 }
 0x236   :  { %629 = vrsqrt.f32 %v154_v44 }
 0x239   :  { %v611_v46 = vpop.permute.xlu1 %610 }
 0x23a   :  { %v613_v49 = vunpack.i.h.bf16 %v611_v46  ;;  %v612_v50 = vunpack.i.l.bf16 %v611_v46 }
 0x23c   :  { %v577_v55 = vpack.c.bf16 %v613_v49, %v612_v50 }
 0x23d   :  { %v621_v54 = vpop.permute.xlu1 %620 }
 0x23e   :  { %v623_v60 = vunpack.i.h.bf16 %v621_v54  ;;  %v622_v61 = vunpack.i.l.bf16 %v621_v54 }
 0x240   :  { %v630_v47 = vpop.eup %629  ;;  %v583_v63 = vpack.c.bf16 %v623_v60, %v622_v61 }
 0x241   :  { %v156_v48 = vmul.f32 %v630_v47, %v148_v35  ;;  %v626_v62 = vpop.permute.xlu1 %625 }
 0x242   :  { %v628_v2 = vunpack.i.h.bf16 %v626_v62  ;;  %v627_v3 = vunpack.i.l.bf16 %v626_v62 }
 0x243   :  { %v165_v51 = vmul.f32 %v163_v28, %v156_v48 }
 0x244   :  { %v586_v4 = vpack.c.bf16 %v628_v2, %v627_v3 }
 0x245   :  { %v174_v53 = vadd.f32 %v172_v45, %v165_v51  ;;  %v312_v5 = vpop.permute.xlu1 %311 }
 0x247   :  { %v175_v58 = vmax.f32 %v174_v53, 0.0 }
 0x249   :  { %537 = vmatmul.mubr.msk.f32.vlgmr.msra.gmra.mrb[0].mxu1 %vm142_vm2, %v175_v58  ;;  %v198_v6 = vpop.permute.xlu1 %197 }
 0x24a   :  { %578 = vmatpush3.bf16.msra.mxu1 %v577_v55  ;;  %555 = vmatprep.mubr.msk.f32.mxu1 %vm690_vm0, %v691_v1 }
 0x24b   :  { %579 = vmatprep.subr.bf16.mxu1 %v689_v0 }
 0x24e   :  { %581 = vmatpush3.bf16.msra.mxu1 %v580_v59 }
 0x24f   :  { %582 = vmatprep.subr.bf16.mxu1 %v689_v0 }
 0x252   :  { %584 = vmatpush3.bf16.msra.mxu1 %v583_v63 }
 0x253   :  { %585 = vmatprep.subr.bf16.mxu1 %v689_v0 }
 0x256   :  { %587 = vmatpush3.bf16.msra.mxu1 %v586_v4 }
 0x259   :  { %556 = vmatmul.mubr.msk.f32.vlgmr.msra.gmra.mrb[2].mxu1 %vm68_vm1, %v312_v5 }
 0x31c   :  { %v269_v7 = vpop.f32.mrb[0].mxu1 }
 0x31d   :  { %v270_v1 = vadd.f32 %v269_v7, %v198_v6  ;;  %v538_v8 = vpop.f32.mrb[1].mxu1 }
 0x31f   :  { %v274_v9 = vsel %vm273_vm3, %v270_v1, 0.0 }
 0x320   :  { %275 = vadd.xlane.f32.xlu1 %v274_v9 }
 0x32c   :  { %v417_v0 = vpop.f32.mrb[2].mxu1 }
 0x32d   :  { %v557_v13 = vpop.f32.mrb[3].mxu1 }
 0x331   :  { %302 = vrot.lane.b32.xlu1 %v479_v10, %s692_s1 }
 0x335   :  { %346 = vrot.lane.b32.xlu1 %v480_v11, %s692_s1 }
 0x339   :  { %439 = vrot.lane.b32.xlu1 %v483_v12, %s692_s1 }
 0x3ad   :  { %v276_v14 = vpop.xlane.xlu1 %275 }
 0x3ae   :  { %v278_v15 = vmul.f32 0.0625, %v276_v14 }
 0x3b0   :  { %v279_v16 = vsub.f32 %v270_v1, %v278_v15 }
 0x3b1   :  { %v303_v17 = vpop.permute.xlu1 %302 }
 0x3b2   :  { %v280_v18 = vmul.f32 %v279_v16, %v279_v16 }
 0x3b4   :  { %v281_v19 = vsel %vm273_vm3, %v280_v18, 0.0 }
 0x3b5   :  { %282 = vadd.xlane.f32.xlu0 %v281_v19  ;;  %v347_v20 = vpop.permute.xlu1 %346 }
 0x3b6   :  { %v418_v21 = vadd.f32 %v417_v0, %v347_v20 }
 0x3b8   :  { %v421_v22 = vmax.f32 %v418_v21, 0.0 }
 0x3b9   :  { %v440_v23 = vpop.permute.xlu1 %439 }
 0x3ba   :  { %v442_v24 = vmul.f32 %v440_v23, %v421_v22 }
 0x3bc   :  { %v444_v25 = vsel %vm443_vm4, %v442_v24, 0.0 }
 0x3bd   :  { %445 = vadd.xlane.f32.xlu1 %v444_v25 }
 0x3cb   :  { %293 = vrot.lane.b32.xlu0 %v478_v26, %s692_s1 }
 0x3cf   :  { %427 = vrot.lane.b32.xlu0 %v482_v27, %s692_s1 }
 0x442   :  { %v283_v28 = vpop.xlane.xlu0 %282 }
 0x443   :  { %v284_v29 = vmul.f32 0.0625, %v283_v28 }
 0x445   :  { %v285_v30 = vadd.f32 1e-05, %v284_v29 }
 0x446   :  { %v294_v32 = vpop.permute.xlu0 %293 }
 0x447   :  { %631 = vrsqrt.f32 %v285_v30 }
 0x44a   :  { %v428_v36 = vpop.permute.xlu0 %427  ;;  %v446_v40 = vpop.xlane.xlu1 %445 }
 0x451   :  { %v632_v31 = vpop.eup %631 }
 0x452   :  { %v287_v33 = vmul.f32 %v632_v31, %v279_v16 }
 0x454   :  { %v296_v34 = vmul.f32 %v294_v32, %v287_v33 }
 0x456   :  { %v305_v35 = vadd.f32 %v303_v17, %v296_v34 }
 0x458   :  { %v306_v37 = vmax.f32 %v305_v35, 0.0 }
 0x45a   :  { %v430_v38 = vmul.f32 %v428_v36, %v306_v37 }
 0x45c   :  { %v431_v39 = vsel %vm273_vm3, %v430_v38, 0.0 }
 0x45d   :  { %432 = vadd.xlane.f32.xlu0 %v431_v39 }
 0x4ea   :  { %v433_v42 = vpop.xlane.xlu0 %432 }
 0x4eb   :  { %v447_v43 = vadd.f32 %v446_v40, %v433_v42 }
 0x4ed   :  { %v452_v44 = vadd.f32 %v484_v41, %v447_v43 }
 0x4ef   :  { %v485_v45 = vmul.f32 -0.2, %v452_v44 }
 0x4f1   :  { %v455_v46 = vmul.f32 1.442695, %v485_v45 }
 0x4f3   :  { %633 = vpow2.f32 %v455_v46 }
 0x4fd   :  { %v634_v47 = vpop.eup %633 }
 0x4fe   :  { %v457_v48 = vadd.f32 1.0, %v634_v47 }
 0x500   :  { %635 = vrcp.f32 %v457_v48 }
 0x50a   :  { %v636_v49 = vpop.eup %635 }
 0x50b   :  { %461 = vrot.lane.b32.xlu0 %v636_v49, %s692_s1 }
 0x57d   :  { %v462_v50 = vpop.permute.xlu0 %461 }
 0x57e   :  { %465 = vst.msk [vmem:[%s781_s2] sm:$0xff] %vm464_vm5, %v462_v50 }
 0x57f   :  { %470 = vsyncpa [#allocation3], 1 }
 0x580   :  { %471 = vsyncpa [#allocation5], 1 }

</bundles_post_ra>
